<compile_context>
chip_gen: v7x
topology: tpu7x:2x2x1
jax: 0.10.0
libtpu: 0.0.40
codegen_flags: <defaults>
</compile_context>

<pallas_src>
import jax
import jax.numpy as jnp
from jax.experimental import pallas as pl
from jax.experimental.pallas import tpu as pltpu

HIDDEN = 128
BATCH_TILE = 1024      # max batch tile (multiple of 8)


def _round_up(v, m):
    return ((v + m - 1) // m) * m


def dqn_kernel(x_ref, w1_ref, b1_ref, w2_ref, b2_ref, w3_ref, b3_ref, o_ref):
    # x: (tb, state_dim) f32; weights bf16 laid out (in_features, out_features);
    # biases f32 (1, out). MXU gets bf16 operands, accumulates in f32;
    # elementwise (bias add + ReLU) stays f32.
    x = x_ref[...].astype(jnp.bfloat16)
    h1 = jnp.dot(x, w1_ref[...], preferred_element_type=jnp.float32) + b1_ref[...]
    h1 = jnp.maximum(h1, 0.0)
    h2 = jnp.dot(h1.astype(jnp.bfloat16), w2_ref[...],
                 preferred_element_type=jnp.float32) + b2_ref[...]
    h2 = jnp.maximum(h2, 0.0)
    out = jnp.dot(h2.astype(jnp.bfloat16), w3_ref[...],
                  preferred_element_type=jnp.float32) + b3_ref[...]
    o_ref[...] = out.astype(o_ref.dtype)


def dqn_forward(x, params, *, batch_tile=BATCH_TILE):
    """Fused 3-layer MLP forward. x: (B, state_dim) f32 -> (B, action_dim) f32."""
    w1, b1, w2, b2, w3, b3 = params
    B, state_dim = x.shape
    hidden = w1.shape[1]
    action_dim = w3.shape[1]
    assert w1.shape == (state_dim, hidden) and w2.shape == (hidden, hidden)
    assert w3.shape == (hidden, action_dim)
    assert b1.shape == (1, hidden) and b2.shape == (1, hidden) and b3.shape == (1, action_dim)

    # Batch tile: multiple of 8, capped by batch_tile, and chosen so the grid
    # has >= ~4 steps on large batches (v7x megacore + DMA double-buffering).
    tb = min(batch_tile, max(8, _round_up(pl.cdiv(B, 4), 8)))
    grid = (pl.cdiv(B, tb),)

    # Weights/biases: full-array blocks, same block every grid step -> VMEM resident.
    def resident(a):
        return pl.BlockSpec(a.shape, lambda i: (0,) * a.ndim)

    flops = 2 * B * (state_dim * hidden + hidden * hidden + hidden * action_dim)
    bytes_accessed = (B * state_dim * 4 + B * action_dim * 4
                      + (state_dim * hidden + hidden * hidden + hidden * action_dim) * 2
                      + (2 * hidden + action_dim) * 4)

    out = pl.pallas_call(
        dqn_kernel,
        out_shape=jax.ShapeDtypeStruct((B, action_dim), jnp.float32),
        grid=grid,
        in_specs=[
            pl.BlockSpec((tb, state_dim), lambda i: (i, 0)),   # x: tiled over batch
            resident(w1), resident(b1),
            resident(w2), resident(b2),
            resident(w3), resident(b3),
        ],
        # Narrow output block: last dim == full array extent (legal), f32 kept.
        out_specs=pl.BlockSpec((tb, action_dim), lambda i: (i, 0)),
        compiler_params=pltpu.CompilerParams(
            dimension_semantics=("parallel",)),
        cost_estimate=pl.CostEstimate(flops=flops, transcendentals=0,
                                      bytes_accessed=bytes_accessed),
    )(x, w1, b1, w2, b2, w3, b3)
    return out


def init_params(key, state_dim, action_dim, hidden=HIDDEN):
    """PyTorch nn.Linear-style init (uniform +/- 1/sqrt(fan_in)).
    Weights stored transposed (in, out) and cast to bf16; biases stay f32."""
    def linear(k, fan_in, fan_out):
        kw, kb = jax.random.split(k)
        bound = 1.0 / jnp.sqrt(fan_in)
        w = jax.random.uniform(kw, (fan_in, fan_out), jnp.float32, -bound, bound)
        b = jax.random.uniform(kb, (1, fan_out), jnp.float32, -bound, bound)
        return w, b

    k1, k2, k3 = jax.random.split(key, 3)
    w1, b1 = linear(k1, state_dim, hidden)
    w2, b2 = linear(k2, hidden, hidden)
    w3, b3 = linear(k3, hidden, action_dim)

    return (w1.astype(jnp.bfloat16), b1,
            w2.astype(jnp.bfloat16), b2,
            w3.astype(jnp.bfloat16), b3)


def dqn_reference(x, params):
    """Pure-JAX reference with identical numerics (bf16 dot operands, f32 accumulation)."""
    w1, b1, w2, b2, w3, b3 = params
    bf = jnp.bfloat16
    h1 = jnp.maximum(
        jnp.dot(x.astype(bf), w1, preferred_element_type=jnp.float32) + b1, 0.0)
    h2 = jnp.maximum(
        jnp.dot(h1.astype(bf), w2, preferred_element_type=jnp.float32) + b2, 0.0)
    return jnp.dot(h2.astype(bf), w3, preferred_element_type=jnp.float32) + b3


if __name__ == "__main__":
    key = jax.random.PRNGKey(0)
    state_dim, action_dim = 16, 8
    kx, kp, kx2 = jax.random.split(key, 3)
    params = init_params(kp, state_dim, action_dim)

    # Small batch (single ragged tile).
    x = jax.random.normal(kx, (2, state_dim), jnp.float32)
    out = dqn_forward(x, params)
    jax.block_until_ready(out)
    ref = dqn_reference(x, params)
    assert out.shape == (2, action_dim)
    assert jnp.allclose(out, ref, atol=1e-3, rtol=1e-3), float(jnp.max(jnp.abs(out - ref)))

    # Multi-step grid with a ragged tail block (exercises masked last block).
    x2 = jax.random.normal(kx2, (37, state_dim), jnp.float32)
    out2 = dqn_forward(x2, params)
    jax.block_until_ready(out2)
    ref2 = dqn_reference(x2, params)
    assert out2.shape == (37, action_dim)
    assert jnp.allclose(out2, ref2, atol=1e-3, rtol=1e-3), float(jnp.max(jnp.abs(out2 - ref2)))

    print("KERNEL_OK")
</pallas_src>

<mosaic_0001>
module attributes {stable_mosaic.version = 11 : i64} {
  func.func @dqn_kernel(%arg0: i32, %arg1: memref<8x16xf32, #tpu.memory_space<vmem>>, %arg2: memref<16x128xbf16, #tpu.memory_space<vmem>>, %arg3: memref<1x128xf32, #tpu.memory_space<vmem>>, %arg4: memref<128x128xbf16, #tpu.memory_space<vmem>>, %arg5: memref<1x128xf32, #tpu.memory_space<vmem>>, %arg6: memref<128x8xbf16, #tpu.memory_space<vmem>>, %arg7: memref<1x8xf32, #tpu.memory_space<vmem>>, %arg8: memref<8x8xf32, #tpu.memory_space<vmem>>) attributes {dimension_semantics = [#tpu.dimension_semantics<parallel>], iteration_bounds = array<i64: 1>, scalar_prefetch = 0 : i64, scratch_operands = 0 : i64, tpu.core_type = #tpu.core_type<tc>, window_params = [{transform_indices = @transform_0, window_bounds = array<i64: 8, 16>}, {pipeline_mode = #tpu.pipeline_mode<synchronous>, transform_indices = @transform_1, window_bounds = array<i64: 16, 128>}, {pipeline_mode = #tpu.pipeline_mode<synchronous>, transform_indices = @transform_2, window_bounds = array<i64: 1, 128>}, {pipeline_mode = #tpu.pipeline_mode<synchronous>, transform_indices = @transform_3, window_bounds = array<i64: 128, 128>}, {pipeline_mode = #tpu.pipeline_mode<synchronous>, transform_indices = @transform_4, window_bounds = array<i64: 1, 128>}, {pipeline_mode = #tpu.pipeline_mode<synchronous>, transform_indices = @transform_5, window_bounds = array<i64: 128, 8>}, {pipeline_mode = #tpu.pipeline_mode<synchronous>, transform_indices = @transform_6, window_bounds = array<i64: 1, 8>}, {transform_indices = @transform_7, window_bounds = array<i64: 8, 8>}]} {
    %c0 = arith.constant 0 : index
    %c0_0 = arith.constant 0 : index
    %0 = vector.load %arg1[%c0, %c0_0] : memref<8x16xf32, #tpu.memory_space<vmem>>, vector<8x16xf32>
    %1 = arith.truncf %0 : vector<8x16xf32> to vector<8x16xbf16>
    %c0_1 = arith.constant 0 : index
    %c0_2 = arith.constant 0 : index
    %2 = vector.load %arg2[%c0_1, %c0_2] : memref<16x128xbf16, #tpu.memory_space<vmem>>, vector<16x128xbf16>
    %cst = arith.constant dense<0.000000e+00> : vector<8x128xf32>
    %3 = tpu.matmul %1, %2, %cst {dimension_numbers = #tpu.dot_dimension_numbers<[1], [0], [0], [1], [0, 0, 1, 1], [], []>} : vector<8x16xbf16>, vector<16x128xbf16>, vector<8x128xf32> -> vector<8x128xf32>
    %c0_3 = arith.constant 0 : index
    %c0_4 = arith.constant 0 : index
    %4 = vector.load %arg3[%c0_3, %c0_4] : memref<1x128xf32, #tpu.memory_space<vmem>>, vector<1x128xf32>
    %5 = vector.broadcast %4 : vector<1x128xf32> to vector<8x128xf32>
    %6 = arith.addf %3, %5 : vector<8x128xf32>
    %cst_5 = arith.constant 0.000000e+00 : f32
    %7 = vector.broadcast %cst_5 : f32 to vector<8x128xf32>
    %8 = arith.maximumf %6, %7 : vector<8x128xf32>
    %9 = arith.truncf %8 : vector<8x128xf32> to vector<8x128xbf16>
    %c0_6 = arith.constant 0 : index
    %c0_7 = arith.constant 0 : index
    %10 = vector.load %arg4[%c0_6, %c0_7] : memref<128x128xbf16, #tpu.memory_space<vmem>>, vector<128x128xbf16>
    %cst_8 = arith.constant dense<0.000000e+00> : vector<8x128xf32>
    %11 = tpu.matmul %9, %10, %cst_8 {dimension_numbers = #tpu.dot_dimension_numbers<[1], [0], [0], [1], [0, 0, 1, 1], [], []>} : vector<8x128xbf16>, vector<128x128xbf16>, vector<8x128xf32> -> vector<8x128xf32>
    %c0_9 = arith.constant 0 : index
    %c0_10 = arith.constant 0 : index
    %12 = vector.load %arg5[%c0_9, %c0_10] : memref<1x128xf32, #tpu.memory_space<vmem>>, vector<1x128xf32>
    %13 = vector.broadcast %12 : vector<1x128xf32> to vector<8x128xf32>
    %14 = arith.addf %11, %13 : vector<8x128xf32>
    %cst_11 = arith.constant 0.000000e+00 : f32
    %15 = vector.broadcast %cst_11 : f32 to vector<8x128xf32>
    %16 = arith.maximumf %14, %15 : vector<8x128xf32>
    %17 = arith.truncf %16 : vector<8x128xf32> to vector<8x128xbf16>
    %c0_12 = arith.constant 0 : index
    %c0_13 = arith.constant 0 : index
    %18 = vector.load %arg6[%c0_12, %c0_13] : memref<128x8xbf16, #tpu.memory_space<vmem>>, vector<128x8xbf16>
    %cst_14 = arith.constant dense<0.000000e+00> : vector<8x8xf32>
    %19 = tpu.matmul %17, %18, %cst_14 {dimension_numbers = #tpu.dot_dimension_numbers<[1], [0], [0], [1], [0, 0, 1, 1], [], []>} : vector<8x128xbf16>, vector<128x8xbf16>, vector<8x8xf32> -> vector<8x8xf32>
    %c0_15 = arith.constant 0 : index
    %c0_16 = arith.constant 0 : index
    %20 = vector.load %arg7[%c0_15, %c0_16] : memref<1x8xf32, #tpu.memory_space<vmem>>, vector<1x8xf32>
    %21 = vector.broadcast %20 : vector<1x8xf32> to vector<8x8xf32>
    %22 = arith.addf %19, %21 : vector<8x8xf32>
    %c0_17 = arith.constant 0 : index
    %c0_18 = arith.constant 0 : index
    %23 = vector.load %arg8[%c0_17, %c0_18] : memref<8x8xf32, #tpu.memory_space<vmem>>, vector<8x8xf32>
    tpu.vector_store %arg8[%c0_17, %c0_18], %22 {strides = array<i32>} : memref<8x8xf32, #tpu.memory_space<vmem>>, vector<8x8xf32>,
    return
  }
  func.func @transform_0(%arg0: i32) -> (i32, i32) {
    %c0_i32 = arith.constant 0 : i32
    %c0_i32_0 = arith.constant 0 : i32
    return %arg0, %c0_i32 : i32, i32
  }
  func.func @transform_1(%arg0: i32) -> (i32, i32) {
    %c0_i32 = arith.constant 0 : i32
    %c0_i32_0 = arith.constant 0 : i32
    %c0_i32_1 = arith.constant 0 : i32
    return %c0_i32, %c0_i32_0 : i32, i32
  }
  func.func @transform_2(%arg0: i32) -> (i32, i32) {
    %c0_i32 = arith.constant 0 : i32
    %c0_i32_0 = arith.constant 0 : i32
    %c0_i32_1 = arith.constant 0 : i32
    return %c0_i32, %c0_i32_0 : i32, i32
  }
  func.func @transform_3(%arg0: i32) -> (i32, i32) {
    %c0_i32 = arith.constant 0 : i32
    %c0_i32_0 = arith.constant 0 : i32
    %c0_i32_1 = arith.constant 0 : i32
    return %c0_i32, %c0_i32_0 : i32, i32
  }
  func.func @transform_4(%arg0: i32) -> (i32, i32) {
    %c0_i32 = arith.constant 0 : i32
    %c0_i32_0 = arith.constant 0 : i32
    %c0_i32_1 = arith.constant 0 : i32
    return %c0_i32, %c0_i32_0 : i32, i32
  }
  func.func @transform_5(%arg0: i32) -> (i32, i32) {
    %c0_i32 = arith.constant 0 : i32
    %c0_i32_0 = arith.constant 0 : i32
    %c0_i32_1 = arith.constant 0 : i32
    return %c0_i32, %c0_i32_0 : i32, i32
  }
  func.func @transform_6(%arg0: i32) -> (i32, i32) {
    %c0_i32 = arith.constant 0 : i32
    %c0_i32_0 = arith.constant 0 : i32
    %c0_i32_1 = arith.constant 0 : i32
    return %c0_i32, %c0_i32_0 : i32, i32
  }
  func.func @transform_7(%arg0: i32) -> (i32, i32) {
    %c0_i32 = arith.constant 0 : i32
    %c0_i32_0 = arith.constant 0 : i32
    return %arg0, %c0_i32 : i32, i32
  }
}

</mosaic_0001>

<bundles_post_ra>
// kernel: tpu_custom_call.1
= control target key start
LH: loop header
LB: loop body
LE: loop exit
PB: predicated region body
PF: predicated region fallthrough
CT: control target
= control target key end

     0   :  { %12 = vsyncpa [#allocation3], 0  ;;  %v466_v1 = vmov 0.0   ;;  %vm45_vm0 = vcmask 130048   ;;  %vm467_vm1 = vmmov 0   ;;  %vm315_vm2 = vcmask 64512   ;;  %s606_s0 = inlined_call_operand.vmem [shape: f32[2,16], index: 0, kind: input, shape index: {}]   ;;  %s607_s1 = inlined_call_operand.vmem [shape: bf16[16,128], index: 1, kind: input, shape index: {}]   ;;  %s608_s2 = inlined_call_operand.vmem [shape: f32[1,128], index: 2, kind: input, shape index: {}]   ;;  %s609_s3 = inlined_call_operand.vmem [shape: bf16[128,128], index: 3, kind: input, shape index: {}]   ;;  %s610_s4 = inlined_call_operand.vmem [shape: f32[1,128], index: 4, kind: input, shape index: {}]   ;;  %s611_s5 = inlined_call_operand.vmem [shape: bf16[128,8], index: 5, kind: input, shape index: {}]   ;;  %s612_s6 = inlined_call_operand.vmem [shape: f32[1,8], index: 6, kind: input, shape index: {}]   ;;  %s613_s7 = inlined_call_operand.hbm [shape: f32[2,8], index: 7, kind: output, shape index: {}]  }
   0x1   :  { %v425_v0 = vld [vmem:[%s607_s1] sm:$0xff]   ;;  %374 = vmatprep.subr.bf16.mxu0 %v466_v1  ;;  %380 = vmatprep.subr.bf16.mxu1 %v466_v1  ;;  %v427_v5 = vld [vmem:[%s609_s3 + $0x8] sm:$0xff]   ;;  %v428_v6 = vld [vmem:[%s609_s3 + $0x10] sm:$0xff]  }
   0x2   :  { %v28_v2 = vld [vmem:[%s606_s0] sm:$0xff]  ;;  %375 = vmatpush3.bf16.msra.mxu0 %v425_v0  ;;  %376 = vmatprep.mubr.msk.bf16.mxu0 %vm467_vm1, %v466_v1  ;;  %v429_v7 = vld [vmem:[%s609_s3 + $0x18] sm:$0xff]   ;;  %v431_v9 = vld [vmem:[%s609_s3 + $0x28] sm:$0xff]  }
   0x3   :  { %v426_v3 = vld [vmem:[%s609_s3] sm:$0xff]   ;;  %v29_v4 = vpack.c.bf16 %v28_v2, %v28_v2  ;;  %396 = vmatprep.mubr.msk.bf16.mxu1 %vm467_vm1, %v466_v1  ;;  %400 = vmatprep.subr.bf16.mxu0 %v466_v1  ;;  %v432_v10 = vld [vmem:[%s609_s3 + $0x30] sm:$0xff]   ;;  %v433_v11 = vld [vmem:[%s609_s3 + $0x38] sm:$0xff]  }
   0x4   :  { %381 = vmatpush3.bf16.msra.mxu1 %v426_v3  ;;  %v430_v8 = vld [vmem:[%s609_s3 + $0x20] sm:$0xff]   ;;  %v435_v13 = vld [vmem:[%s611_s5 + $0x8] sm:$0xff]   ;;  %v436_v14 = vld [vmem:[%s611_s5 + $0x10] sm:$0xff]  }
   0x5   :  { %382 = vmatprep.subr.bf16.mxu1 %v466_v1  ;;  %377 = vmatmul.mubr.msk.bf16.vlgmr.msra.gmra.mrb[0].mxu0 %vm45_vm0, %v29_v4  ;;  %v434_v12 = vld [vmem:[%s611_s5] sm:$0xff]   ;;  %v437_v15 = vld [vmem:[%s611_s5 + $0x18] sm:$0xff]   ;;  %v439_v17 = vld [vmem:[%s611_s5 + $0x28] sm:$0xff]  }
   0x6   :  { %416 = vmatprep.mubr.msk.bf16.mxu0 %vm467_vm1, %v466_v1  ;;  %401 = vmatpush3.bf16.msra.mxu0 %v434_v12  ;;  %v438_v16 = vld [vmem:[%s611_s5 + $0x20] sm:$0xff]   ;;  %v440_v26 = vld [vmem:[%s611_s5 + $0x30] sm:$0xff]   ;;  %v441_v27 = vld [vmem:[%s611_s5 + $0x38] sm:$0xff]  }
   0x7   :  { %402 = vmatprep.subr.bf16.mxu0 %v466_v1  ;;  %v333_v18 = vld [vmem:[%s608_s2] ss:$0 sm:$0xff] }
   0x8   :  { %383 = vmatpush3.bf16.msra.mxu1 %v427_v5  ;;  %v336_v28 = vld [vmem:[%s610_s4] ss:$0 sm:$0xff] }
   0x9   :  { %384 = vmatprep.subr.bf16.mxu1 %v466_v1  ;;  %v345_v36 = vld [vmem:[%s612_s6] ss:$0 sm:$0xff] }
   0xa   :  { %403 = vmatpush3.bf16.msra.mxu0 %v435_v13 }
   0xb   :  { %404 = vmatprep.subr.bf16.mxu0 %v466_v1 }
   0xc   :  { %385 = vmatpush3.bf16.msra.mxu1 %v428_v6 }
   0xd   :  { %386 = vmatprep.subr.bf16.mxu1 %v466_v1 }
   0xe   :  { %405 = vmatpush3.bf16.msra.mxu0 %v436_v14 }
   0xf   :  { %406 = vmatprep.subr.bf16.mxu0 %v466_v1 }
  0x10   :  { %387 = vmatpush3.bf16.msra.mxu1 %v429_v7 }
  0x11   :  { %388 = vmatprep.subr.bf16.mxu1 %v466_v1 }
  0x12   :  { %407 = vmatpush3.bf16.msra.mxu0 %v437_v15 }
  0x13   :  { %408 = vmatprep.subr.bf16.mxu0 %v466_v1 }
  0x14   :  { %389 = vmatpush3.bf16.msra.mxu1 %v430_v8 }
  0x15   :  { %390 = vmatprep.subr.bf16.mxu1 %v466_v1 }
  0x16   :  { %409 = vmatpush3.bf16.msra.mxu0 %v438_v16 }
  0x17   :  { %410 = vmatprep.subr.bf16.mxu0 %v466_v1 }
  0x18   :  { %391 = vmatpush3.bf16.msra.mxu1 %v431_v9 }
  0x19   :  { %392 = vmatprep.subr.bf16.mxu1 %v466_v1 }
  0x1a   :  { %411 = vmatpush3.bf16.msra.mxu0 %v439_v17 }
  0x1b   :  { %412 = vmatprep.subr.bf16.mxu0 %v466_v1 }
  0x1c   :  { %393 = vmatpush3.bf16.msra.mxu1 %v432_v10 }
  0x1d   :  { %394 = vmatprep.subr.bf16.mxu1 %v466_v1 }
  0x1e   :  { %413 = vmatpush3.bf16.msra.mxu0 %v440_v26 }
  0x1f   :  { %414 = vmatprep.subr.bf16.mxu0 %v466_v1 }
  0x20   :  { %395 = vmatpush3.bf16.msra.mxu1 %v433_v11 }
  0x22   :  { %415 = vmatpush3.bf16.msra.mxu0 %v441_v27 }
  0xd8   :  { %v83_v19 = vpop.f32.mrb[0].mxu0 }
  0xd9   :  { %v84_v20 = vadd.f32 %v333_v18, %v83_v19  ;;  %v378_v21 = vpop.f32.mrb[1].mxu0 }
  0xda   :  { %v86_v22 = vpop.f32.mrb[2].mxu0 }
  0xdb   :  { %v89_v23 = vmax.f32 %v84_v20, 0.0  ;;  %v379_v24 = vpop.f32.mrb[3].mxu0 }
  0xdd   :  { %v90_v25 = vpack.c.bf16 %v89_v23, %v89_v23 }
  0xdf   :  { %397 = vmatmul.mubr.bf16.vlgmr.msra.gmra.mrb[0].mxu1 %v90_v25 }
 0x1b2   :  { %v196_v29 = vpop.f32.mrb[0].mxu1 }
 0x1b3   :  { %v197_v30 = vadd.f32 %v336_v28, %v196_v29  ;;  %v398_v31 = vpop.f32.mrb[1].mxu1 }
 0x1b4   :  { %v199_v32 = vpop.f32.mrb[2].mxu1 }
 0x1b5   :  { %v202_v33 = vmax.f32 %v197_v30, 0.0  ;;  %v399_v34 = vpop.f32.mrb[3].mxu1 }
 0x1b7   :  { %v203_v35 = vpack.c.bf16 %v202_v33, %v202_v33 }
 0x1b9   :  { %417 = vmatmul.mubr.bf16.vlgmr.msra.gmra.mrb[4].mxu0 %v203_v35 }
 0x28c   :  { %v309_v37 = vpop.f32.mrb[4].mxu0 }
 0x28d   :  { %v310_v38 = vadd.f32 %v345_v36, %v309_v37  ;;  %v418_v39 = vpop.f32.mrb[5].mxu0 }
 0x28e   :  { %v312_v40 = vpop.f32.mrb[6].mxu0 }
 0x28f   :  { %316 = vst.msk [vmem:[#allocation2] sm:$0xff] %vm315_vm2, %v310_v38  ;;  %v419_v41 = vpop.f32.mrb[7].mxu0 }
 0x290   :  { %321 = vsyncadd [#allocation3], 96  ;;  %s468_s4 = smov [#allocation2]  }
 0x291   :  { %s322_s5 = sshll.u32 %s468_s4, 4  ;;  %s323_s5 = int_to_ptr.vmem [resolvable:$true] %s322_s5 }
 0x292   :  { %s442_s14 = scalar_lea.vmem %s323_s5, 32  ;;  %s446_s15 = scalar_lea.vmem %s323_s5, 128 }
 0x293   :  { %p443_p0 = scmp.ne.s32.totalorder %s323_s5, %s442_s14  ;;  %p447_p1 = scmp.lt.s32.totalorder %s323_s5, %s323_s5 }
 0x294   :  { %p448_p2 = scmp.lt.s32.totalorder %s446_s15, %s442_s14 }
 0x296   :  { %p449_p3 = por %p448_p2, %p447_p1 }
 0x298   :  { %p450_p4 = pnand %p449_p3, %p443_p0 }
 0x29a   :  { %453 = shalt.err (!%p450_p4)
}
 0x29b   :  { %s454_s17 = scalar_lea.hbm %s613_s7, 32 }
 0x29c   :  { %p455_p5 = scmp.ne.s32.totalorder %s613_s7, %s454_s17  ;;  %p458_p6 = scmp.lt.u32.totalorder %s454_s17, %s613_s7 }
 0x29e   :  { %p460_p7 = pnand %p458_p6, %p455_p5 }
 0x2a0   :  { %463 = shalt.err (!%p460_p7)
}
 0x2a1   :  { %s469_s22 = smov 32   ;;  %s470_s23 = smov 2  }
 0x2a2   :  { %328 = dma.vmem_to_hbm [thread:$0]  %s323_s5, 32, %s613_s7, [#allocation3], %s469_s22, %s469_s22, %s470_s23  }
 0x2a3   :  { %464 = dma.done.wait [#allocation3], 128  }
 0x2a4   :  { %465 = vsyncadd [#allocation3], 4294967168 }
 0x2a5   :  { %332 = vsyncpa [#allocation3], 1 }

</bundles_post_ra>
